<compile_context>
chip_gen: v5e
topology: v5e:2x2
jax: 0.10.0
libtpu: 0.0.40
codegen_flags: <defaults>
</compile_context>

<pallas_src>
import functools

import jax
import jax.numpy as jnp
from jax.experimental import pallas as pl
from jax.experimental.pallas import tpu as pltpu


def _phi_full_k_kernel(mp_ref, eps_ref, o_ref):
    # One MXU matmul per grid step over the full K (= c) axis; f32 accumulation.
    o_ref[...] = jnp.dot(mp_ref[...], eps_ref[...],
                         preferred_element_type=jnp.float32)


def _phi_k_tiled_kernel(mp_ref, eps_ref, o_ref, acc_ref):
    # K-tiled accumulator variant (P1+P3): k is the innermost, "arbitrary" axis.
    @pl.when(pl.program_id(2) == 0)
    def _init():
        acc_ref[...] = jnp.zeros_like(acc_ref)

    acc_ref[...] += jnp.dot(mp_ref[...], eps_ref[...],
                            preferred_element_type=jnp.float32)

    @pl.when(pl.program_id(2) == pl.num_programs(2) - 1)
    def _finalize():
        o_ref[...] = acc_ref[...]


def _round_up(x, m):
    return ((x + m - 1) // m) * m


def _vmem_budget_bytes():
    # ~75% of physical VMEM: ~48 MiB on v7x, ~96 MiB on v5e/v6e.
    # Conservative fallback assumes the smallest VMEM (v7x, 64 MiB).
    try:
        cap = int(pltpu.get_tpu_info().vmem_capacity_bytes)
    except Exception:
        cap = 64 << 20
    return (3 * cap) // 4


@functools.partial(
    jax.jit,
    static_argnames=("tm", "tn", "tk", "use_bf16", "allow_small_fallback"))
def hphi_forward(matrix_parents, epsilon, *, tm=256, tn=512, tk=2048,
                 use_bf16=True, allow_small_fallback=False):
    """Phi = matrix_parents @ Epsilon (the hPhi.forward() pass), f32 output."""
    c, c2 = matrix_parents.shape
    c3, d = epsilon.shape
    assert c == c2 == c3, "matrix_parents must be (c,c) and epsilon (c,d)"

    # 0/1 indicator matrix is exact in bf16; Epsilon drops ~8 mantissa bits of
    # input precision but the MXU accumulates in f32.
    in_dtype = jnp.bfloat16 if use_bf16 else jnp.float32
    ib = 2 if use_bf16 else 4
    a = matrix_parents.astype(in_dtype)
    b = epsilon.astype(in_dtype)

    # At tiny production sizes the standalone custom call is pure overhead;
    # callers can opt into letting XLA fuse the dot instead.
    if allow_small_fallback and (2 * c * c * d) < (1 << 22):
        return jnp.dot(a, b, preferred_element_type=jnp.float32)

    # Lane-dense N: pad d (module default 50) to a multiple of 128 so Epsilon
    # loads and Phi stores are unmasked vld/vst; slice the result back.
    d_pad = _round_up(d, 128)
    if d_pad != d:
        b = jnp.pad(b, ((0, 0), (0, d_pad - d)))

    tm = c if c <= tm else tm            # multiple of 8, or the full M extent
    tn = d_pad if d_pad <= tn else tn    # multiple of 128, or the full N extent
    ni = pl.cdiv(c, tm)                  # row tiles of matrix_parents / Phi
    nj = pl.cdiv(d_pad, tn)              # column tiles of Epsilon / Phi

    budget = _vmem_budget_bytes()
    cost = pl.CostEstimate(
        flops=2 * c * c * d,
        transcendentals=0,
        bytes_accessed=ib * (c * c + c * d) + 4 * c * d,
    )

    # Full-K footprint: A double-buffered, Epsilon single-buffered when it is
    # grid-invariant (nj == 1, i.e. d_pad <= tn), output double-buffered (f32).
    eps_single = (nj == 1 and ni > 1)
    full_k_bytes = (2 * tm * c * ib
                    + (1 if eps_single else 2) * c * tn * ib
                    + 2 * tm * tn * 4)

    if full_k_bytes <= budget:
        # ---- Un-K-tiled path: one dot per (i, j) tile, no accumulator. ----
        # i (rows) is the LEADING parallel axis so megacore sharding has an
        # axis of extent >= 2 whenever c >= 2*tm; j innermost keeps the
        # (tm, c) matrix_parents slab resident across column tiles.
        eps_spec_kwargs = {}
        if eps_single:
            eps_spec_kwargs["pipeline_mode"] = pl.Buffered(1)
        vmem_limit = min(budget,
                         max(full_k_bytes * 3 // 2 + (2 << 20), 16 << 20))
        out_pad = pl.pallas_call(
            _phi_full_k_kernel,
            out_shape=jax.ShapeDtypeStruct((c, d_pad), jnp.float32),
            grid_spec=pltpu.PrefetchScalarGridSpec(
                num_scalar_prefetch=0,
                grid=(ni, nj),
                in_specs=[
                    pl.BlockSpec((tm, c), lambda i, j: (i, 0)),   # row slab
                    pl.BlockSpec((c, tn), lambda i, j: (0, j),    # col slab
                                 **eps_spec_kwargs),
                ],
                out_specs=pl.BlockSpec((tm, tn), lambda i, j: (i, j)),
            ),
            compiler_params=pltpu.CompilerParams(
                dimension_semantics=("parallel", "parallel"),
                vmem_limit_bytes=int(vmem_limit),
            ),
            cost_estimate=cost,
        )(a, b)
    else:
        # ---- K-tiled accumulator path (very large c): keep tiles wide and
        # reduce over k with an f32 VMEM accumulator instead of shrinking
        # tm/tn to squeeze full-K slabs under the per-generation budget. ----
        tk_eff = min(tk, _round_up(c, 128))
        while tk_eff > 128:
            blk = (2 * tm * tk_eff * ib + 2 * tk_eff * tn * ib
                   + 2 * tm * tn * 4 + tm * tn * 4)
            if blk <= budget:
                break
            tk_eff //= 2
        ck = _round_up(c, tk_eff)
        if ck != c:
            # Zero-pad the contraction axis so partial K tiles never feed
            # garbage into the accumulator (zeros contribute nothing).
            a = jnp.pad(a, ((0, 0), (0, ck - c)))
            b = jnp.pad(b, ((0, ck - c), (0, 0)))
        nk = ck // tk_eff
        blk_bytes = (2 * tm * tk_eff * ib + 2 * tk_eff * tn * ib
                     + 2 * tm * tn * 4 + tm * tn * 4)
        vmem_limit = min(budget,
                         max(blk_bytes * 3 // 2 + (2 << 20), 16 << 20))
        out_pad = pl.pallas_call(
            _phi_k_tiled_kernel,
            out_shape=jax.ShapeDtypeStruct((c, d_pad), jnp.float32),
            grid_spec=pltpu.PrefetchScalarGridSpec(
                num_scalar_prefetch=0,
                grid=(ni, nj, nk),
                in_specs=[
                    pl.BlockSpec((tm, tk_eff), lambda i, j, k: (i, k)),
                    pl.BlockSpec((tk_eff, tn), lambda i, j, k: (k, j)),
                ],
                out_specs=pl.BlockSpec((tm, tn), lambda i, j, k: (i, j)),
                scratch_shapes=[pltpu.VMEM((tm, tn), jnp.float32)],
            ),
            compiler_params=pltpu.CompilerParams(
                dimension_semantics=("parallel", "parallel", "arbitrary"),
                vmem_limit_bytes=int(vmem_limit),
            ),
            cost_estimate=cost,
        )(a, b)

    return out_pad[:, :d] if d_pad != d else out_pad


if __name__ == "__main__":
    # Small deterministic shapes consistent with hPhi.__init__:
    #   c = matrix_parents.shape[0] (#hierarchy nodes), d = 50 (module default).
    c, d = 24, 50

    key = jax.random.PRNGKey(0)
    k_eps, k_mask = jax.random.split(key)

    # Synthetic hierarchy "ancestor" matrix: lower-triangular 0/1 indicator
    # with ones on the diagonal, mimicking matrix_parents' structure.
    tri = jnp.tril(jnp.ones((c, c), dtype=jnp.float32))
    mask = (jax.random.uniform(k_mask, (c, c)) < 0.4).astype(jnp.float32)
    matrix_parents = jnp.where(
        jnp.eye(c, dtype=bool), 1.0, tri * mask
    ).astype(jnp.float32)

    # Epsilon corresponds to self.epsilon (c, d); in the PyTorch module it is
    # trained with Adam in fit() (training glue, not part of forward()).
    # TODO(synk): fit()/predict() (Adam loop, cdist/argmin pseudo-labeling) are
    # host-side training glue with no single-kernel Pallas equivalent.
    epsilon = jax.random.normal(k_eps, (c, d), dtype=jnp.float32)

    ref = matrix_parents @ epsilon

    # bf16-operand path (production default): 0/1 matrix exact in bf16,
    # f32 accumulation -> validate with a bf16-appropriate tolerance.
    phi_bf16 = jax.block_until_ready(hphi_forward(matrix_parents, epsilon))
    assert phi_bf16.shape == (c, d)
    assert jnp.allclose(phi_bf16, ref, atol=5e-2, rtol=2e-2)

    # f32-operand path: matches the plain JAX reference tightly.
    phi_f32 = jax.block_until_ready(
        hphi_forward(matrix_parents, epsilon, use_bf16=False))
    assert phi_f32.shape == (c, d)
    assert jnp.allclose(phi_f32, ref, atol=1e-5, rtol=1e-5)

    print("KERNEL_OK")
</pallas_src>

<mosaic_0001>
module attributes {stable_mosaic.version = 11 : i64} {
  func.func @_phi_full_k_kernel(%arg0: i32, %arg1: i32, %arg2: memref<24x24xbf16, #tpu.memory_space<vmem>>, %arg3: memref<24x128xbf16, #tpu.memory_space<vmem>>, %arg4: memref<24x128xf32, #tpu.memory_space<vmem>>) attributes {dimension_semantics = [#tpu.dimension_semantics<parallel>, #tpu.dimension_semantics<parallel>], iteration_bounds = array<i64: 1, 1>, scalar_prefetch = 0 : i64, scratch_operands = 0 : i64, tpu.core_type = #tpu.core_type<tc>, window_params = [{transform_indices = @transform_0, window_bounds = array<i64: 24, 24>}, {transform_indices = @transform_1, window_bounds = array<i64: 24, 128>}, {transform_indices = @transform_2, window_bounds = array<i64: 24, 128>}]} {
    %c0 = arith.constant 0 : index
    %c0_0 = arith.constant 0 : index
    %0 = vector.load %arg2[%c0, %c0_0] : memref<24x24xbf16, #tpu.memory_space<vmem>>, vector<24x24xbf16>
    %c0_1 = arith.constant 0 : index
    %c0_2 = arith.constant 0 : index
    %1 = vector.load %arg3[%c0_1, %c0_2] : memref<24x128xbf16, #tpu.memory_space<vmem>>, vector<24x128xbf16>
    %cst = arith.constant dense<0.000000e+00> : vector<24x128xf32>
    %2 = tpu.matmul %0, %1, %cst {dimension_numbers = #tpu.dot_dimension_numbers<[1], [0], [0], [1], [0, 0, 1, 1], [], []>} : vector<24x24xbf16>, vector<24x128xbf16>, vector<24x128xf32> -> vector<24x128xf32>
    %c0_3 = arith.constant 0 : index
    %c0_4 = arith.constant 0 : index
    %3 = vector.load %arg4[%c0_3, %c0_4] : memref<24x128xf32, #tpu.memory_space<vmem>>, vector<24x128xf32>
    tpu.vector_store %arg4[%c0_3, %c0_4], %2 {strides = array<i32>} : memref<24x128xf32, #tpu.memory_space<vmem>>, vector<24x128xf32>,
    return
  }
  func.func @transform_0(%arg0: i32, %arg1: i32) -> (i32, i32) {
    %c0_i32 = arith.constant 0 : i32
    %c0_i32_0 = arith.constant 0 : i32
    return %arg0, %c0_i32 : i32, i32
  }
  func.func @transform_1(%arg0: i32, %arg1: i32) -> (i32, i32) {
    %c0_i32 = arith.constant 0 : i32
    %c0_i32_0 = arith.constant 0 : i32
    return %c0_i32, %arg1 : i32, i32
  }
  func.func @transform_2(%arg0: i32, %arg1: i32) -> (i32, i32) {
    %c0_i32 = arith.constant 0 : i32
    return %arg0, %arg1 : i32, i32
  }
}

</mosaic_0001>

<bundles_post_ra>
// kernel: hphi_forward.1
= control target key start
LH: loop header
LB: loop body
LE: loop exit
PB: predicated region body
PF: predicated region fallthrough
CT: control target
= control target key end

     0   :  { %s162_s0 = inlined_call_operand.vmem [shape: bf16[24,24], index: 0, kind: input, shape index: {}]   ;;  %s163_s1 = inlined_call_operand.vmem [shape: bf16[24,128], index: 1, kind: input, shape index: {}]   ;;  %s164_s2 = inlined_call_operand.hbm [shape: f32[24,128], index: 2, kind: output, shape index: {}]  }
   0x1   :  { %v18_v0 = vld [vmem:[%s163_s1 + $0x8] sm:$0xf] }
   0x2   :  { %v32_v1 = vunpack.c.l.b16 %v18_v0 }
   0x3   :  { %7 = vsyncpa [#allocation3], 0  ;;  %vm43_vm0 = vcmask 1043456   ;;  %v15_v2 = vld [vmem:[%s162_s0 + $0x8] sm:$0xf]  ;;  %v97_v6 = vld [vmem:[%s163_s1] sm:$0xff] }
   0x4   :  { %v34_v3 = vpack.c.b16 %v32_v1, %v32_v1  ;;  %v24_v5 = vunpack.c.l.b16 %v15_v2  ;;  %v96_v7 = vld [vmem:[%s162_s0] sm:$0xff]  ;;  %vm36_vm1 = vcmask 195584   ;;  %s129_s17 = smov [#allocation2]   ;;  %s74_s1 = sshll.u32 %s164_s2, 4  ;;  %s75_s1 = int_to_ptr.hbm [resolvable:$true] %s74_s1 }
   0x5   :  { %s72_s18 = sshll.u32 %s129_s17, 4  ;;  %s130_s0 = smov 128   ;;  %s73_s18 = int_to_ptr.vmem [resolvable:$true] %s72_s18 }
   0x6   :  { %v45_v4 = vsel %vm43_vm0, %v34_v3, 0  ;;  %v26_v8 = vpack.c.b16 %v24_v5, %v24_v5  ;;  %s131_s21 = smov 8  }
   0x7   :  { %53 = vmatpush.bf16.msra.mxu0 %v45_v4  ;;  %98 = vmatpush.bf16.msra.mxu1 %v45_v4 }
   0xb   :  { %54 = vmatpush.bf16.msra.mxu0 %v97_v6  ;;  %99 = vmatpush.bf16.msra.mxu1 %v97_v6 }
   0xe   :  { %94 = vmatmul.msk.bf16.vlgmr.msra.gmra.mxu0 %vm36_vm1, %v96_v7  ;;  %95 = vmatmul.msk.bf16.vlgmr.msra.gmra.mxu1 %vm36_vm1, %v26_v8 }
  0x8b   :  { %v56_v9 = vpop.f32.mrf.mxu0  ;;  %v61_v10 = vpop.f32.mrf.mxu1 }
  0x8c   :  { %65 = vst [vmem:[#allocation2] sm:$0xff] %v56_v9 }
  0x8d   :  { %67 = vst [vmem:[#allocation2 + $0x10] sm:$0xff] %v61_v10 }
  0x93   :  { %v58_v11 = vpop.f32.mrf.mxu0  ;;  %v63_v12 = vpop.f32.mrf.mxu1 }
  0x94   :  { %66 = vst [vmem:[#allocation2 + $0x8] sm:$0xff] %v58_v11 }
  0x95   :  { %80 = dma.vmem_to_hbm [thread:$0]  %s73_s18, 384, %s75_s1, [#allocation3], %s130_s0, %s130_s0, %s131_s21  }
  0x96   :  { %127 = dma.done.wait [#allocation3], 384  }
  0x97   :  { %128 = vsyncadd [#allocation3], 4294966912 }
  0x98   :  { %85 = vsyncpa [#allocation3], 1 }

</bundles_post_ra>
